<compile_context>
chip_gen: v6e
topology: v6e:2x2x1
jax: 0.10.0
libtpu: 0.0.40
codegen_flags: <defaults>
</compile_context>

<pallas_src>
import functools

import jax
import jax.numpy as jnp
from jax.experimental import pallas as pl
from jax.experimental.pallas import tpu as pltpu


def _round_up(v, m):
    return -(-v // m) * m


def _physical_vmem_bytes():
    # Per-TensorCore VMEM (v5e/v6e: 128 MiB, v7x: 64 MiB). Conservative
    # fallback (v7x figure) if the query is unavailable.
    try:
        return int(pltpu.get_tpu_info().vmem_capacity_bytes)
    except Exception:
        return 64 << 20


# ---------------------------------------------------------------------------
# Kernels
# ---------------------------------------------------------------------------
def _kernel_resident(x_ref, w1_ref, b1_ref, w23_ref, b23_ref, o_ref):
    # Stage 1: x @ W1 (MXU, f32 accumulation) + bias, LeakyReLU(0.7) in f32.
    h = jnp.dot(x_ref[...], w1_ref[...], preferred_element_type=jnp.float32)
    h = h + b1_ref[...]
    h = jnp.maximum(h, 0.7 * h)          # LeakyReLU(0.7) (slope < 1)
    # Stage 2: fused skinny heads -> one (tb, 2) projection, bias, ReLU.
    o = jnp.dot(h.astype(w23_ref.dtype), w23_ref[...],
                preferred_element_type=jnp.float32)
    o_ref[...] = jnp.maximum(o + b23_ref[...], 0.0)


def _kernel_ksplit(x_ref, w1_ref, b1_ref, w23_ref, b23_ref, o_ref, h_acc):
    # K-split over the (E, E) weight: accumulate h in a f32 VMEM scratch,
    # finalize (bias + LeakyReLU + fused heads) on the last K step.
    k = pl.program_id(1)

    @pl.when(k == 0)
    def _():
        h_acc[...] = jnp.zeros_like(h_acc)

    h_acc[...] += jnp.dot(x_ref[...], w1_ref[...],
                          preferred_element_type=jnp.float32)

    @pl.when(k == pl.num_programs(1) - 1)
    def _():
        h = h_acc[...] + b1_ref[...]
        h = jnp.maximum(h, 0.7 * h)
        o = jnp.dot(h.astype(w23_ref.dtype), w23_ref[...],
                    preferred_element_type=jnp.float32)
        o_ref[...] = jnp.maximum(o + b23_ref[...], 0.0)


# ---------------------------------------------------------------------------
# Wrapper
# ---------------------------------------------------------------------------
@functools.partial(
    jax.jit,
    static_argnames=("block_b", "block_k", "use_bf16", "force_k_split"))
def aux_multioutput(x, w1, b1, w2, b2, w3, b3, *, block_b=1024, block_k=512,
                    use_bf16=True, force_k_split=False):
    """x: (B, E); w1: (E, E); b1: (1, E); w2/w3: (E, 1); b2/b3: (1, 1)."""
    B, E = x.shape

    in_dtype = jnp.bfloat16 if use_bf16 else jnp.float32
    itemsize = 2 if use_bf16 else 4

    # Fuse the two single-column heads into one (E, 2) weight / (1, 2) bias.
    # Matmul operands in in_dtype; biases (and all accumulation) stay f32.
    w23 = jnp.concatenate([w2, w3], axis=1).astype(in_dtype)     # (E, 2)
    b23 = jnp.concatenate([b2, b3], axis=1).astype(jnp.float32)  # (1, 2)
    b1f = b1.astype(jnp.float32)                                 # (1, E)
    x_in = x.astype(in_dtype)
    w1_in = w1.astype(in_dtype)

    # Pad E to a multiple of 128 lanes: full MXU K/N tiles, dense lane vregs.
    # Zero padding is exact (padded h columns are 0 -> LeakyReLU(0)=0 -> the
    # zero-padded W23 rows contribute nothing).
    Ep = _round_up(max(E, 128), 128)
    if Ep != E:
        x_in = jnp.pad(x_in, ((0, 0), (0, Ep - E)))
        w1_in = jnp.pad(w1_in, ((0, Ep - E), (0, Ep - E)))
        b1f = jnp.pad(b1f, ((0, 0), (0, Ep - E)))
        w23 = jnp.pad(w23, ((0, Ep - E), (0, 0)))

    # Batch tile: multiple of the packed sublane count (16 for bf16).
    sub = 16 if use_bf16 else 8
    tb = _round_up(min(block_b, max(B, 1)), sub)

    vmem_cap = (_physical_vmem_bytes() * 7) // 8   # headroom for internals

    # ---- VMEM accounting (includes the (tb, Ep) f32 h temporary). ----------
    resident_w1 = Ep * Ep * itemsize                   # single buffer (Buffered(1))
    const_bytes = Ep * 4 + Ep * 2 * itemsize + 8       # b1, W23, b23 (1 buffer each)

    def resident_footprint(tb_):
        return (resident_w1 + const_bytes
                + 2 * tb_ * Ep * itemsize              # double-buffered x tiles
                + tb_ * Ep * 4                         # h temporary (f32)
                + 2 * tb_ * 2 * 4)                     # double-buffered out tiles

    tk = min(Ep, _round_up(max(block_k, 128), 128))

    def ksplit_footprint(tb_, tk_):
        return (const_bytes
                + 2 * tb_ * tk_ * itemsize             # x tiles
                + 2 * tk_ * Ep * itemsize              # W1 K-slabs
                + 2 * tb_ * Ep * 4                     # h accumulator + activated copy
                + 2 * tb_ * 2 * 4)

    use_ksplit = force_k_split or (resident_footprint(sub) > vmem_cap)
    if not use_ksplit:
        while tb > sub and resident_footprint(tb) > vmem_cap:
            tb = _round_up(tb // 2, sub)
        footprint = resident_footprint(tb)
    else:
        while tb > sub and ksplit_footprint(tb, tk) > vmem_cap:
            tb = _round_up(tb // 2, sub)
        while tk > 128 and ksplit_footprint(tb, tk) > vmem_cap:
            tk //= 2
        footprint = ksplit_footprint(tb, tk)

    pB = _round_up(B, tb)
    if pB != B:
        x_in = jnp.pad(x_in, ((0, pB - B), (0, 0)))
    nb = pB // tb

    vmem_limit = min(max(footprint + (4 << 20), 32 << 20), vmem_cap)

    if not use_ksplit:
        # Resident-W1 path: stream batch tiles, weights single-buffered.
        grid_spec = pltpu.PrefetchScalarGridSpec(
            num_scalar_prefetch=0,
            grid=(nb,),
            in_specs=[
                pl.BlockSpec((tb, Ep), lambda i: (i, 0)),                   # x
                pl.BlockSpec((Ep, Ep), lambda i: (0, 0),
                             pipeline_mode=pl.Buffered(1)),                 # W1
                pl.BlockSpec((1, Ep), lambda i: (0, 0),
                             pipeline_mode=pl.Buffered(1)),                 # b1
                pl.BlockSpec((Ep, 2), lambda i: (0, 0),
                             pipeline_mode=pl.Buffered(1)),                 # W23
                pl.BlockSpec((1, 2), lambda i: (0, 0),
                             pipeline_mode=pl.Buffered(1)),                 # b23
            ],
            out_specs=pl.BlockSpec((tb, 2), lambda i: (i, 0)),
        )
        kernel = _kernel_resident
        dims = ("parallel",)
        # TODO(synk): verify on v7x (xprof/bundle dump) that the single
        # "parallel" batch axis actually shards across the 2 TensorCores.
    else:
        # K-split path: W1 streamed in (tk, Ep) slabs, h accumulated in VMEM.
        nk = Ep // tk
        grid_spec = pltpu.PrefetchScalarGridSpec(
            num_scalar_prefetch=0,
            grid=(nb, nk),
            in_specs=[
                pl.BlockSpec((tb, tk), lambda i, k: (i, k)),                # x
                pl.BlockSpec((tk, Ep), lambda i, k: (k, 0)),                # W1
                pl.BlockSpec((1, Ep), lambda i, k: (0, 0),
                             pipeline_mode=pl.Buffered(1)),                 # b1
                pl.BlockSpec((Ep, 2), lambda i, k: (0, 0),
                             pipeline_mode=pl.Buffered(1)),                 # W23
                pl.BlockSpec((1, 2), lambda i, k: (0, 0),
                             pipeline_mode=pl.Buffered(1)),                 # b23
            ],
            out_specs=pl.BlockSpec((tb, 2), lambda i, k: (i, 0)),
            scratch_shapes=[pltpu.VMEM((tb, Ep), jnp.float32)],
        )
        kernel = _kernel_ksplit
        dims = ("parallel", "arbitrary")

    out = pl.pallas_call(
        kernel,
        out_shape=jax.ShapeDtypeStruct((pB, 2), jnp.float32),
        grid_spec=grid_spec,
        compiler_params=pltpu.CompilerParams(
            dimension_semantics=dims,
            vmem_limit_bytes=vmem_limit,
        ),
    )(x_in, w1_in, b1f, w23, b23)

    out = out[:B]
    return out[:, 0:1], out[:, 1:2]


# ---------------------------------------------------------------------------
# Reference / params
# ---------------------------------------------------------------------------
def init_params(key, embed_dim):
    # PyTorch-Linear-style uniform(-1/sqrt(fan_in), 1/sqrt(fan_in)) init.
    k1, k2, k3, k4, k5, k6 = jax.random.split(key, 6)
    bound = 1.0 / jnp.sqrt(embed_dim)
    w1 = jax.random.uniform(k1, (embed_dim, embed_dim), jnp.float32, -bound, bound)
    b1 = jax.random.uniform(k2, (1, embed_dim), jnp.float32, -bound, bound)
    w2 = jax.random.uniform(k3, (embed_dim, 1), jnp.float32, -bound, bound)
    b2 = jax.random.uniform(k4, (1, 1), jnp.float32, -bound, bound)
    w3 = jax.random.uniform(k5, (embed_dim, 1), jnp.float32, -bound, bound)
    b3 = jax.random.uniform(k6, (1, 1), jnp.float32, -bound, bound)
    return w1, b1, w2, b2, w3, b3


def reference(x, w1, b1, w2, b2, w3, b3):
    h = x @ w1 + b1
    h = jnp.where(h > 0, h, 0.7 * h)
    o1 = jnp.maximum(h @ w2 + b2, 0.0)
    o2 = jnp.maximum(h @ w3 + b3, 0.0)
    return o1, o2


# TODO(synk): regFlag=False (Softmax over dim=1 of a width-1 output) is
# degenerate (always 1.0) and is not implemented; this covers regFlag=True.

if __name__ == "__main__":
    key = jax.random.PRNGKey(0)
    kx, kp, kx2, kp2 = jax.random.split(key, 4)

    # --- Small shape, resident-W1 path --------------------------------------
    B, E = 8, 32
    x = jax.random.normal(kx, (B, E), jnp.float32)
    params = init_params(kp, E)
    ref1, ref2 = reference(x, *params)

    # f32 operands: strict tolerance.
    out1, out2 = aux_multioutput(x, *params, use_bf16=False)
    out1, out2 = jax.block_until_ready((out1, out2))
    assert out1.shape == (B, 1) and out2.shape == (B, 1)
    assert jnp.allclose(out1, ref1, atol=1e-5, rtol=1e-5)
    assert jnp.allclose(out2, ref2, atol=1e-5, rtol=1e-5)

    # bf16 operands (default fast path on v6e/v7x): loose tolerance.
    b1o, b2o = aux_multioutput(x, *params)
    b1o, b2o = jax.block_until_ready((b1o, b2o))
    assert jnp.allclose(b1o, ref1, atol=5e-2, rtol=5e-2)
    assert jnp.allclose(b2o, ref2, atol=5e-2, rtol=5e-2)

    # --- K-split (large-E / v7x) path, exercised at a small shape -----------
    B2, E2 = 64, 256
    x2 = jax.random.normal(kx2, (B2, E2), jnp.float32)
    params2 = init_params(kp2, E2)
    r1, r2 = reference(x2, *params2)
    k1o, k2o = aux_multioutput(x2, *params2, use_bf16=False,
                               force_k_split=True, block_k=128)
    k1o, k2o = jax.block_until_ready((k1o, k2o))
    assert k1o.shape == (B2, 1) and k2o.shape == (B2, 1)
    assert jnp.allclose(k1o, r1, atol=1e-4, rtol=1e-4)
    assert jnp.allclose(k2o, r2, atol=1e-4, rtol=1e-4)

    print("KERNEL_OK")
</pallas_src>

<mosaic_0001>
module attributes {stable_mosaic.version = 11 : i64} {
  func.func @_kernel_resident(%arg0: i32, %arg1: memref<8x128xf32, #tpu.memory_space<vmem>>, %arg2: memref<128x128xf32, #tpu.memory_space<vmem>>, %arg3: memref<1x128xf32, #tpu.memory_space<vmem>>, %arg4: memref<128x2xf32, #tpu.memory_space<vmem>>, %arg5: memref<1x2xf32, #tpu.memory_space<vmem>>, %arg6: memref<8x2xf32, #tpu.memory_space<vmem>>) attributes {dimension_semantics = [#tpu.dimension_semantics<parallel>], iteration_bounds = array<i64: 1>, scalar_prefetch = 0 : i64, scratch_operands = 0 : i64, tpu.core_type = #tpu.core_type<tc>, window_params = [{transform_indices = @transform_0, window_bounds = array<i64: 8, 128>}, {pipeline_mode = #tpu.pipeline_mode<synchronous>, transform_indices = @transform_1, window_bounds = array<i64: 128, 128>}, {pipeline_mode = #tpu.pipeline_mode<synchronous>, transform_indices = @transform_2, window_bounds = array<i64: 1, 128>}, {pipeline_mode = #tpu.pipeline_mode<synchronous>, transform_indices = @transform_3, window_bounds = array<i64: 128, 2>}, {pipeline_mode = #tpu.pipeline_mode<synchronous>, transform_indices = @transform_4, window_bounds = array<i64: 1, 2>}, {transform_indices = @transform_5, window_bounds = array<i64: 8, 2>}]} {
    %c0 = arith.constant 0 : index
    %c0_0 = arith.constant 0 : index
    %0 = vector.load %arg1[%c0, %c0_0] : memref<8x128xf32, #tpu.memory_space<vmem>>, vector<8x128xf32>
    %c0_1 = arith.constant 0 : index
    %c0_2 = arith.constant 0 : index
    %1 = vector.load %arg2[%c0_1, %c0_2] : memref<128x128xf32, #tpu.memory_space<vmem>>, vector<128x128xf32>
    %cst = arith.constant dense<0.000000e+00> : vector<8x128xf32>
    %2 = tpu.matmul %0, %1, %cst {dimension_numbers = #tpu.dot_dimension_numbers<[1], [0], [0], [1], [0, 0, 1, 1], [], []>} : vector<8x128xf32>, vector<128x128xf32>, vector<8x128xf32> -> vector<8x128xf32>
    %c0_3 = arith.constant 0 : index
    %c0_4 = arith.constant 0 : index
    %3 = vector.load %arg3[%c0_3, %c0_4] : memref<1x128xf32, #tpu.memory_space<vmem>>, vector<1x128xf32>
    %4 = vector.broadcast %3 : vector<1x128xf32> to vector<8x128xf32>
    %5 = arith.addf %2, %4 : vector<8x128xf32>
    %cst_5 = arith.constant 0.699999988 : f32
    %6 = vector.broadcast %cst_5 : f32 to vector<8x128xf32>
    %7 = arith.mulf %6, %5 : vector<8x128xf32>
    %8 = arith.maximumf %5, %7 : vector<8x128xf32>
    %c0_6 = arith.constant 0 : index
    %c0_7 = arith.constant 0 : index
    %9 = vector.load %arg4[%c0_6, %c0_7] : memref<128x2xf32, #tpu.memory_space<vmem>>, vector<128x2xf32>
    %cst_8 = arith.constant dense<0.000000e+00> : vector<8x2xf32>
    %10 = tpu.matmul %8, %9, %cst_8 {dimension_numbers = #tpu.dot_dimension_numbers<[1], [0], [0], [1], [0, 0, 1, 1], [], []>} : vector<8x128xf32>, vector<128x2xf32>, vector<8x2xf32> -> vector<8x2xf32>
    %c0_9 = arith.constant 0 : index
    %c0_10 = arith.constant 0 : index
    %11 = vector.load %arg5[%c0_9, %c0_10] : memref<1x2xf32, #tpu.memory_space<vmem>>, vector<1x2xf32>
    %12 = vector.broadcast %11 : vector<1x2xf32> to vector<8x2xf32>
    %13 = arith.addf %10, %12 : vector<8x2xf32>
    %cst_11 = arith.constant 0.000000e+00 : f32
    %14 = vector.broadcast %cst_11 : f32 to vector<8x2xf32>
    %15 = arith.maximumf %13, %14 : vector<8x2xf32>
    %c0_12 = arith.constant 0 : index
    %c0_13 = arith.constant 0 : index
    %16 = vector.load %arg6[%c0_12, %c0_13] : memref<8x2xf32, #tpu.memory_space<vmem>>, vector<8x2xf32>
    tpu.vector_store %arg6[%c0_12, %c0_13], %15 {strides = array<i32>} : memref<8x2xf32, #tpu.memory_space<vmem>>, vector<8x2xf32>,
    return
  }
  func.func @transform_0(%arg0: i32) -> (i32, i32) {
    %c0_i32 = arith.constant 0 : i32
    %c0_i32_0 = arith.constant 0 : i32
    return %arg0, %c0_i32 : i32, i32
  }
  func.func @transform_1(%arg0: i32) -> (i32, i32) {
    %c0_i32 = arith.constant 0 : i32
    %c0_i32_0 = arith.constant 0 : i32
    %c0_i32_1 = arith.constant 0 : i32
    return %c0_i32, %c0_i32_0 : i32, i32
  }
  func.func @transform_2(%arg0: i32) -> (i32, i32) {
    %c0_i32 = arith.constant 0 : i32
    %c0_i32_0 = arith.constant 0 : i32
    %c0_i32_1 = arith.constant 0 : i32
    return %c0_i32, %c0_i32_0 : i32, i32
  }
  func.func @transform_3(%arg0: i32) -> (i32, i32) {
    %c0_i32 = arith.constant 0 : i32
    %c0_i32_0 = arith.constant 0 : i32
    %c0_i32_1 = arith.constant 0 : i32
    return %c0_i32, %c0_i32_0 : i32, i32
  }
  func.func @transform_4(%arg0: i32) -> (i32, i32) {
    %c0_i32 = arith.constant 0 : i32
    %c0_i32_0 = arith.constant 0 : i32
    %c0_i32_1 = arith.constant 0 : i32
    return %c0_i32, %c0_i32_0 : i32, i32
  }
  func.func @transform_5(%arg0: i32) -> (i32, i32) {
    %c0_i32 = arith.constant 0 : i32
    %c0_i32_0 = arith.constant 0 : i32
    return %arg0, %c0_i32 : i32, i32
  }
}

</mosaic_0001>

<bundles_post_ra>
// kernel: aux_multioutput.1
= control target key start
LH: loop header
LB: loop body
LE: loop exit
PB: predicated region body
PF: predicated region fallthrough
CT: control target
= control target key end

     0   :  { %v324_v0 = vmov 0.0   ;;  %vm325_vm0 = vmmov 0   ;;  %vm210_vm1 = vcmask 15360   ;;  %s498_s1 = inlined_call_operand.vmem [shape: f32[128,128], index: 1, kind: input, shape index: {}]   ;;  %s499_s3 = inlined_call_operand.vmem [shape: f32[128,2], index: 3, kind: input, shape index: {}]   ;;  %s500_s0 = inlined_call_operand.vmem [shape: f32[8,128], index: 0, kind: input, shape index: {}]   ;;  %s501_s2 = inlined_call_operand.vmem [shape: f32[1,128], index: 2, kind: input, shape index: {}]   ;;  %s502_s4 = inlined_call_operand.vmem [shape: f32[1,2], index: 4, kind: input, shape index: {}]   ;;  %s503_s5 = inlined_call_operand.vmem [shape: f32[8,2], index: 5, kind: output, shape index: {}]  }
   0x1   :  { %252 = vmatprep.subr.mxu0 %v324_v0  ;;  %v36_v1 = vld [vmem:[%s498_s1 + $0x78] sm:$0xff]  ;;  %v35_v2 = vld [vmem:[%s498_s1 + $0x70] sm:$0xff]  ;;  %284 = vmatprep.mubr.msk.f32.mxu0 %vm325_vm0, %v324_v0  ;;  %v34_v3 = vld [vmem:[%s498_s1 + $0x68] sm:$0xff] }
   0x2   :  { %253 = vmatpush3.msra.mxu0 %v36_v1  ;;  %287 = vmatprep.subr.mxu1 %v324_v0  ;;  %v33_v4 = vld [vmem:[%s498_s1 + $0x60] sm:$0xff]  ;;  %v131_v5 = vld [vmem:[%s499_s3 + $0x78] sm:$0xff]  ;;  %v130_v7 = vld [vmem:[%s499_s3 + $0x70] sm:$0xff] }
   0x3   :  { %254 = vmatprep.subr.mxu0 %v324_v0  ;;  %319 = vmatprep.mubr.msk.f32.mxu1 %vm325_vm0, %v324_v0  ;;  %v32_v6 = vld [vmem:[%s498_s1 + $0x58] sm:$0xff]  ;;  %v129_v8 = vld [vmem:[%s499_s3 + $0x68] sm:$0xff]  ;;  %v31_v9 = vld [vmem:[%s498_s1 + $0x50] sm:$0xff] }
   0x4   :  { %255 = vmatpush3.msra.mxu0 %v35_v2  ;;  %288 = vmatpush3.msra.mxu1 %v131_v5  ;;  %v128_v10 = vld [vmem:[%s499_s3 + $0x60] sm:$0xff]  ;;  %v30_v11 = vld [vmem:[%s498_s1 + $0x48] sm:$0xff]  ;;  %v127_v12 = vld [vmem:[%s499_s3 + $0x58] sm:$0xff] }
   0x5   :  { %256 = vmatprep.subr.mxu0 %v324_v0  ;;  %289 = vmatprep.subr.mxu1 %v324_v0  ;;  %v29_v13 = vld [vmem:[%s498_s1 + $0x40] sm:$0xff]  ;;  %v126_v14 = vld [vmem:[%s499_s3 + $0x50] sm:$0xff]  ;;  %v28_v15 = vld [vmem:[%s498_s1 + $0x38] sm:$0xff] }
   0x6   :  { %257 = vmatpush3.msra.mxu0 %v34_v3  ;;  %290 = vmatpush3.msra.mxu1 %v130_v7  ;;  %v125_v16 = vld [vmem:[%s499_s3 + $0x48] sm:$0xff]  ;;  %v27_v17 = vld [vmem:[%s498_s1 + $0x30] sm:$0xff]  ;;  %v124_v18 = vld [vmem:[%s499_s3 + $0x40] sm:$0xff] }
   0x7   :  { %258 = vmatprep.subr.mxu0 %v324_v0  ;;  %291 = vmatprep.subr.mxu1 %v324_v0  ;;  %v26_v19 = vld [vmem:[%s498_s1 + $0x28] sm:$0xff]  ;;  %v123_v20 = vld [vmem:[%s499_s3 + $0x38] sm:$0xff]  ;;  %v25_v21 = vld [vmem:[%s498_s1 + $0x20] sm:$0xff] }
   0x8   :  { %259 = vmatpush3.msra.mxu0 %v33_v4  ;;  %292 = vmatpush3.msra.mxu1 %v129_v8  ;;  %v122_v22 = vld [vmem:[%s499_s3 + $0x30] sm:$0xff]  ;;  %v24_v23 = vld [vmem:[%s498_s1 + $0x18] sm:$0xff]  ;;  %v121_v24 = vld [vmem:[%s499_s3 + $0x28] sm:$0xff] }
   0x9   :  { %260 = vmatprep.subr.mxu0 %v324_v0  ;;  %293 = vmatprep.subr.mxu1 %v324_v0  ;;  %v23_v25 = vld [vmem:[%s498_s1 + $0x10] sm:$0xff]  ;;  %v120_v26 = vld [vmem:[%s499_s3 + $0x20] sm:$0xff]  ;;  %v22_v27 = vld [vmem:[%s498_s1 + $0x8] sm:$0xff] }
   0xa   :  { %261 = vmatpush3.msra.mxu0 %v32_v6  ;;  %294 = vmatpush3.msra.mxu1 %v128_v10  ;;  %v21_v28 = vld [vmem:[%s498_s1] sm:$0xff]  ;;  %v119_v30 = vld [vmem:[%s499_s3 + $0x18] sm:$0xff]  ;;  %v118_v31 = vld [vmem:[%s499_s3 + $0x10] sm:$0xff] }
   0xb   :  { %262 = vmatprep.subr.mxu0 %v324_v0  ;;  %295 = vmatprep.subr.mxu1 %v324_v0  ;;  %v20_v29 = vld [vmem:[%s500_s0] sm:$0xff]  ;;  %v117_v32 = vld [vmem:[%s499_s3 + $0x8] sm:$0xff] }
   0xc   :  { %263 = vmatpush3.msra.mxu0 %v31_v9  ;;  %296 = vmatpush3.msra.mxu1 %v127_v12  ;;  %v116_v33 = vld [vmem:[%s499_s3] sm:$0xff] }
   0xd   :  { %264 = vmatprep.subr.mxu0 %v324_v0  ;;  %297 = vmatprep.subr.mxu1 %v324_v0  ;;  %v216_v34 = vld [vmem:[%s501_s2] ss:$0 sm:$0xff] }
   0xe   :  { %265 = vmatpush3.msra.mxu0 %v30_v11  ;;  %298 = vmatpush3.msra.mxu1 %v126_v14  ;;  %v217_v40 = vld [vmem:[%s502_s4] ss:$0 sm:$0xff] }
   0xf   :  { %266 = vmatprep.subr.mxu0 %v324_v0  ;;  %299 = vmatprep.subr.mxu1 %v324_v0 }
  0x10   :  { %267 = vmatpush3.msra.mxu0 %v29_v13  ;;  %300 = vmatpush3.msra.mxu1 %v125_v16 }
  0x11   :  { %268 = vmatprep.subr.mxu0 %v324_v0  ;;  %301 = vmatprep.subr.mxu1 %v324_v0 }
  0x12   :  { %269 = vmatpush3.msra.mxu0 %v28_v15  ;;  %302 = vmatpush3.msra.mxu1 %v124_v18 }
  0x13   :  { %270 = vmatprep.subr.mxu0 %v324_v0  ;;  %303 = vmatprep.subr.mxu1 %v324_v0 }
  0x14   :  { %271 = vmatpush3.msra.mxu0 %v27_v17  ;;  %304 = vmatpush3.msra.mxu1 %v123_v20 }
  0x15   :  { %272 = vmatprep.subr.mxu0 %v324_v0  ;;  %305 = vmatprep.subr.mxu1 %v324_v0 }
  0x16   :  { %273 = vmatpush3.msra.mxu0 %v26_v19  ;;  %306 = vmatpush3.msra.mxu1 %v122_v22 }
  0x17   :  { %274 = vmatprep.subr.mxu0 %v324_v0  ;;  %307 = vmatprep.subr.mxu1 %v324_v0 }
  0x18   :  { %275 = vmatpush3.msra.mxu0 %v25_v21  ;;  %308 = vmatpush3.msra.mxu1 %v121_v24 }
  0x19   :  { %276 = vmatprep.subr.mxu0 %v324_v0  ;;  %309 = vmatprep.subr.mxu1 %v324_v0 }
  0x1a   :  { %277 = vmatpush3.msra.mxu0 %v24_v23  ;;  %310 = vmatpush3.msra.mxu1 %v120_v26 }
  0x1b   :  { %278 = vmatprep.subr.mxu0 %v324_v0  ;;  %311 = vmatprep.subr.mxu1 %v324_v0 }
  0x1c   :  { %279 = vmatpush3.msra.mxu0 %v23_v25  ;;  %312 = vmatpush3.msra.mxu1 %v119_v30 }
  0x1d   :  { %280 = vmatprep.subr.mxu0 %v324_v0  ;;  %313 = vmatprep.subr.mxu1 %v324_v0 }
  0x1e   :  { %281 = vmatpush3.msra.mxu0 %v22_v27  ;;  %314 = vmatpush3.msra.mxu1 %v118_v31 }
  0x1f   :  { %282 = vmatprep.subr.mxu0 %v324_v0  ;;  %315 = vmatprep.subr.mxu1 %v324_v0 }
  0x20   :  { %283 = vmatpush3.msra.mxu0 %v21_v28  ;;  %316 = vmatpush3.msra.mxu1 %v117_v32 }
  0x21   :  { %285 = vmatmul.mubr.f32.vlgmr.msra.gmra.mxu0 %v20_v29  ;;  %317 = vmatprep.subr.mxu1 %v324_v0 }
  0x22   :  { %318 = vmatpush3.msra.mxu1 %v116_v33 }
  0xe1   :  { %v110_v35 = vpop.f32.mrf.mxu0 }
  0xe2   :  { %v111_v36 = vadd.f32 %v216_v34, %v110_v35 }
  0xe3   :  { %v286_v37 = vpop.f32.mrf.mxu0 }
  0xe4   :  { %v114_v38 = vmul.f32 0.7, %v111_v36 }
  0xe6   :  { %v115_v39 = vmax.f32 %v111_v36, %v114_v38 }
  0xe8   :  { %320 = vmatmul.mubr.f32.vlgmr.msra.gmra.mxu1 %v115_v39 }
 0x1a8   :  { %v205_v41 = vpop.f32.mrf.mxu1 }
 0x1a9   :  { %v206_v42 = vadd.f32 %v217_v40, %v205_v41 }
 0x1aa   :  { %v321_v43 = vpop.f32.mrf.mxu1 }
 0x1ab   :  { %v209_v44 = vmax.f32 %v206_v42, 0.0 }
 0x1ad   :  { %211 = vst.msk [vmem:[%s503_s5] sm:$0xff] %vm210_vm1, %v209_v44 }

</bundles_post_ra>
